<compile_context>
chip_gen: v7x
topology: tpu7x:2x2x1
jax: 0.10.0
libtpu: 0.0.40
codegen_flags: <defaults>
</compile_context>

<pallas_src>
import functools

import jax
import jax.numpy as jnp
from jax.experimental import pallas as pl
from jax.experimental.pallas import tpu as pltpu


# --------------------------------------------------------------------------- #
# Packed kernel: pixels on (sublane, lane), classes unrolled on the major dim. #
# --------------------------------------------------------------------------- #
def _dice_sums_kernel_packed(x_ref, t_ref, out_ref, acc_ref, *, rows, has_tail):
    """Accumulate per-class sums with a sublane+lane dense pixel layout.

    x_ref:   (1, C, R, 128) logits tile (original dtype)
    t_ref:   (1, R, 128)    int32 target class per pixel
    out_ref: (1, 3, C)      float32 per-batch-element [sum_tp, sum_p, sum_mask]
    acc_ref: (3, C, R, 128) float32 per-position partial sums (VMEM scratch)
    """
    s = pl.program_id(1)

    @pl.when(s == 0)
    def _():
        acc_ref[...] = jnp.zeros_like(acc_ref)

    num_classes = x_ref.shape[1]
    R, L = t_ref.shape[1], t_ref.shape[2]
    t = t_ref[0]                                               # (R, 128) int32

    if has_tail:
        # Tail tile of a cdiv grid: rows past the image end are garbage memory.
        row = jax.lax.broadcasted_iota(jnp.int32, (R, L), 0)
        valid = row < (rows - s * R)                           # (R, 128) bool
        valid_f = valid.astype(jnp.float32)
        # Sanitize targets so garbage rows never match a real class.
        t = jnp.where(valid, t, jnp.int32(num_classes))
        base = valid_f * jnp.float32(1e-8)                     # off-target mask value
    else:
        valid = None
        valid_f = None
        base = jnp.float32(1e-8)

    # Per-class logits as clean (R, 128) slabs (static major-dim slices).
    xs = []
    for c in range(num_classes):
        xc = x_ref[0, c].astype(jnp.float32)                   # (R, 128)
        if has_tail:
            xc = jnp.where(valid, xc, 0.0)                     # keep exp() finite
        xs.append(xc)

    # Softmax over the class axis: pure element-wise VPU work on full vregs.
    m = xs[0]
    for c in range(1, num_classes):
        m = jnp.maximum(m, xs[c])
    es = [jnp.exp(xc - m) for xc in xs]                        # EUP
    den = es[0]
    for c in range(1, num_classes):
        den = den + es[c]
    inv = 1.0 / den                                            # (R, 128)

    for c in range(num_classes):
        p_c = es[c] * inv                                      # softmax prob of class c
        if has_tail:
            p_c = p_c * valid_f                                # zero invalid rows
        oh = t == c                                            # (R, 128) bool
        mval = jnp.where(oh, 1.0, base)                        # class_mask column c
        acc_ref[0, c] += p_c * mval                            # -> sum(P * class_mask)
        acc_ref[1, c] += p_c                                   # -> sum(P)
        acc_ref[2, c] += mval                                  # -> sum(class_mask)

    @pl.when(s == pl.num_programs(1) - 1)
    def _():
        # Single cross-lane/sublane reduce + tiny store per batch element.
        red = jnp.sum(acc_ref[...], axis=3)                    # (3, C, R)
        out_ref[0] = jnp.sum(red, axis=2)                      # (3, C)


# --------------------------------------------------------------------------- #
# Fallback kernel: classes on sublanes, pixels on lanes (any hw).             #
# --------------------------------------------------------------------------- #
def _dice_sums_kernel_lanes(x_ref, t_ref, out_ref, acc_ref, *, hw, has_tail):
    """Accumulate per-class sums over spatial tiles (pixels on the lane axis).

    x_ref:   (1, C, T) logits tile (original dtype), classes on sublanes
    t_ref:   (1, 1, T) int32 target class index per pixel (lane-dense)
    out_ref: (1, 3, C) float32 per-batch-element [sum_tp, sum_p, sum_mask]
    acc_ref: (3, C, T) float32 per-lane partial sums (VMEM scratch)
    """
    s = pl.program_id(1)

    @pl.when(s == 0)
    def _():
        acc_ref[...] = jnp.zeros_like(acc_ref)

    x = x_ref[0].astype(jnp.float32)                           # (C, T)
    t = t_ref[0]                                               # (1, T) int32
    C, T = x.shape

    if has_tail:
        lane = jax.lax.broadcasted_iota(jnp.int32, (1, T), 1)  # (1, T)
        valid = lane < (hw - s * T)                            # (1, T) bool
        x = jnp.where(valid, x, 0.0)                           # keep exp() finite

    # Softmax over the class (sublane) axis.
    m = jnp.max(x, axis=0, keepdims=True)                      # (1, T)
    e = jnp.exp(x - m)                                         # (C, T)
    inv = 1.0 / jnp.sum(e, axis=0, keepdims=True)              # (1, T)
    p = e * inv                                                # (C, T)

    # class_mask: 1.0 at the target class, 1e-8 elsewhere (scatter_ semantics).
    cls = jax.lax.broadcasted_iota(jnp.int32, (C, T), 0)       # (C, T)
    mask = jnp.where(cls == t, 1.0, 1e-8)                      # (C, T)

    if has_tail:
        mask = jnp.where(valid, mask, 0.0)
        p = jnp.where(valid, p, 0.0)

    # Per-lane partial sums: pure VPU adds, no per-tile cross-lane reduction.
    acc_ref[0, :, :] += p * mask                               # -> sum(P * class_mask)
    acc_ref[1, :, :] += p                                      # -> sum(P)
    acc_ref[2, :, :] += mask                                   # -> sum(class_mask)

    @pl.when(s == pl.num_programs(1) - 1)
    def _():
        out_ref[0] = jnp.sum(acc_ref[...], axis=2)             # (3, C)


# --------------------------------------------------------------------------- #
# Tile pickers (VMEM-budgeted, safe under v5e's 16 MiB scoped-VMEM default).   #
# --------------------------------------------------------------------------- #
def _pick_row_tile(rows, num_classes, itemsize, vmem_budget_bytes=6 * 1024 * 1024):
    """Rows (of 128 pixels) per block for the packed layout."""
    per_row = 128 * (num_classes * itemsize * 2   # double-buffered logits
                     + 4 * 2                      # double-buffered int32 targets
                     + num_classes * 4 * 3)       # f32 accumulators
    r = (vmem_budget_bytes // per_row) // 32 * 32
    r = max(32, min(r, 512))
    if rows <= r:
        return rows      # whole image in one block (block == full dim is legal)
    return r


def _pick_spatial_tile(hw, num_classes, itemsize, vmem_budget_bytes=2 * 1024 * 1024):
    """Lane tile (multiple of 128) for the fallback layout."""
    per_lane = (num_classes * itemsize * 2
                + 4 * 2
                + num_classes * 4 * 3)
    t = max(128, (vmem_budget_bytes // per_lane) // 128 * 128)
    t = min(t, 8192)
    if hw <= t:
        return hw
    return t


# --------------------------------------------------------------------------- #
# Wrapper matching DiceLoss.forward (alpha/beta are recomputed in forward).    #
# --------------------------------------------------------------------------- #
def dice_loss(predicts, targets, weight=None, *, size_average=True, reduce=True):
    N, C = predicts.shape[0], predicts.shape[1]
    hw = 1
    for d in predicts.shape[2:]:
        hw *= d

    itemsize = jnp.dtype(predicts.dtype).itemsize
    compiler_params = pltpu.CompilerParams(
        dimension_semantics=("parallel", "arbitrary"))

    if hw % 128 == 0:
        # Packed path: pixels fill sublanes + lanes, classes on the major dim.
        rows = hw // 128
        x = predicts.reshape(N, C, rows, 128)                  # free reshape
        t = targets.reshape(N, rows, 128).astype(jnp.int32)    # free reshape
        R = _pick_row_tile(rows, C, itemsize)
        S = pl.cdiv(rows, R)
        has_tail = (rows % R) != 0

        sums_per_n = pl.pallas_call(
            functools.partial(_dice_sums_kernel_packed, rows=rows,
                              has_tail=has_tail),
            out_shape=jax.ShapeDtypeStruct((N, 3, C), jnp.float32),
            grid_spec=pltpu.PrefetchScalarGridSpec(
                num_scalar_prefetch=0,
                grid=(N, S),
                in_specs=[
                    pl.BlockSpec((1, C, R, 128), lambda n, s: (n, 0, s, 0)),
                    pl.BlockSpec((1, R, 128), lambda n, s: (n, s, 0)),
                ],
                out_specs=pl.BlockSpec((1, 3, C), lambda n, s: (n, 0, 0)),
                scratch_shapes=[pltpu.VMEM((3, C, R, 128), jnp.float32)],
            ),
            compiler_params=compiler_params,
        )(x, t)
    else:
        # Fallback path: classes on sublanes, pixels on lanes.
        x = predicts.reshape(N, C, hw)
        t = targets.reshape(N, 1, hw).astype(jnp.int32)
        T = _pick_spatial_tile(hw, C, itemsize)
        S = pl.cdiv(hw, T)
        has_tail = (hw % T) != 0

        sums_per_n = pl.pallas_call(
            functools.partial(_dice_sums_kernel_lanes, hw=hw, has_tail=has_tail),
            out_shape=jax.ShapeDtypeStruct((N, 3, C), jnp.float32),
            grid_spec=pltpu.PrefetchScalarGridSpec(
                num_scalar_prefetch=0,
                grid=(N, S),
                in_specs=[
                    pl.BlockSpec((1, C, T), lambda n, s: (n, 0, s)),
                    pl.BlockSpec((1, 1, T), lambda n, s: (n, 0, s)),
                ],
                out_specs=pl.BlockSpec((1, 3, C), lambda n, s: (n, 0, 0)),
                scratch_shapes=[pltpu.VMEM((3, C, T), jnp.float32)],
            ),
            compiler_params=compiler_params,
        )(x, t)

    # Combine per-batch-element partials (keeps the batch grid axis safely
    # parallel across TensorCores) and recover FP / FN algebraically:
    #   fp = sum(P*(1-mask)) = sum_P - sum_TP,  fn = sum((1-P)*mask) = sum_mask - sum_TP
    sums = jnp.sum(sums_per_n, axis=0)                          # (3, C)
    sum_tp, sum_p, sum_mask = sums[0], sums[1], sums[2]
    sum_fp = sum_p - sum_tp
    sum_fn = sum_mask - sum_tp

    smooth = jnp.full((C,), 1e-5, dtype=jnp.float32)
    alpha = jnp.clip(sum_fp / (sum_fp + sum_fn + smooth), 0.2, 0.8)
    beta = 1.0 - alpha

    num = sum_tp
    den = num + alpha * sum_fp + beta * sum_fn
    dice = num / (den + smooth)

    if not reduce:
        return 1.0 - dice

    loss = 1.0 - dice
    if weight is not None:
        w = jnp.squeeze(weight, axis=0) if weight.ndim > 1 else weight
        loss = loss * w
    loss = jnp.sum(loss)
    if size_average:
        if weight is not None:
            w = jnp.squeeze(weight, axis=0) if weight.ndim > 1 else weight
            loss = loss / jnp.sum(w)
        else:
            loss = loss / C
    return loss


def _reference(predicts, targets, size_average=True, reduce=True):
    """Pure-JAX reference mirroring the PyTorch module, for a correctness check."""
    C = predicts.shape[1]
    x = jnp.transpose(predicts, (0, 2, 3, 1)).reshape(-1, C).astype(jnp.float32)
    t = targets.reshape(-1)
    p = jax.nn.softmax(x, axis=1)
    class_mask = jnp.full_like(x, 1e-8).at[jnp.arange(x.shape[0]), t].set(1.0)
    tp = (p * class_mask).sum(0)
    fp = (p * (1.0 - class_mask)).sum(0)
    fn = ((1.0 - p) * class_mask).sum(0)
    smooth = jnp.full((C,), 1e-5, jnp.float32)
    alpha = jnp.clip(fp / (fp + fn + smooth), 0.2, 0.8)
    beta = 1.0 - alpha
    dice = tp / (tp + alpha * fp + beta * fn + smooth)
    loss = (1.0 - dice).sum()
    if size_average:
        loss = loss / C
    return loss


if __name__ == "__main__":
    key = jax.random.PRNGKey(0)
    kx, kt = jax.random.split(key)

    # Main case: NCHW with hw % 128 == 0 -> packed (sublane+lane dense) kernel.
    N, C, H, W = 2, 4, 16, 16                    # hw = 256 pixels per image
    predicts = jax.random.normal(kx, (N, C, H, W), dtype=jnp.float32)
    targets = jax.random.randint(kt, (N, H, W), 0, C, dtype=jnp.int32)
    out = jax.block_until_ready(dice_loss(predicts, targets))
    ref = _reference(predicts, targets)
    assert jnp.allclose(out, ref, atol=1e-4, rtol=1e-4), (out, ref)

    # Ragged case: hw % 128 != 0 -> lane-layout fallback kernel with tail masking.
    N2, C2, H2, W2 = 2, 3, 15, 15                # hw = 225 pixels per image
    p2 = jax.random.normal(kx, (N2, C2, H2, W2), dtype=jnp.float32)
    t2 = jax.random.randint(kt, (N2, H2, W2), 0, C2, dtype=jnp.int32)
    out2 = jax.block_until_ready(dice_loss(p2, t2))
    ref2 = _reference(p2, t2)
    assert jnp.allclose(out2, ref2, atol=1e-4, rtol=1e-4), (out2, ref2)

    print("KERNEL_OK")
</pallas_src>

<mosaic_0001>
module attributes {stable_mosaic.version = 11 : i64} {
  func.func @_dice_sums_kernel_packed(%arg0: i32, %arg1: i32, %arg2: memref<1x4x2x128xf32, #tpu.memory_space<vmem>>, %arg3: memref<1x2x128xi32, #tpu.memory_space<vmem>>, %arg4: memref<1x3x4xf32, #tpu.memory_space<vmem>>, %arg5: memref<3x4x2x128xf32, #tpu.memory_space<vmem>>) attributes {dimension_semantics = [#tpu.dimension_semantics<parallel>, #tpu.dimension_semantics<arbitrary>], iteration_bounds = array<i64: 2, 1>, scalar_prefetch = 0 : i64, scratch_operands = 1 : i64, tpu.core_type = #tpu.core_type<tc>, window_params = [{transform_indices = @transform_0, window_bounds = array<i64: 1, 4, 2, 128>}, {transform_indices = @transform_1, window_bounds = array<i64: 1, 2, 128>}, {transform_indices = @transform_2, window_bounds = array<i64: 1, 3, 4>}]} {
    %c0_i32 = arith.constant 0 : i32
    %0 = arith.cmpi eq, %arg1, %c0_i32 : i32
    %1 = arith.extui %0 : i1 to i32
    %c0_i32_0 = arith.constant 0 : i32
    %2 = arith.cmpi ne, %1, %c0_i32_0 : i32
    scf.if %2 {
      %cst_123 = arith.constant 0.000000e+00 : f32
      %132 = vector.broadcast %cst_123 : f32 to vector<3x4x2x128xf32>
      %c0_124 = arith.constant 0 : index
      %c0_125 = arith.constant 0 : index
      %c0_126 = arith.constant 0 : index
      %c0_127 = arith.constant 0 : index
      %133 = vector.load %arg5[%c0_124, %c0_125, %c0_126, %c0_127] : memref<3x4x2x128xf32, #tpu.memory_space<vmem>>, vector<3x4x2x128xf32>
      tpu.vector_store %arg5[%c0_124, %c0_125, %c0_126, %c0_127], %132 {strides = array<i32>} : memref<3x4x2x128xf32, #tpu.memory_space<vmem>>, vector<3x4x2x128xf32>,
    } else {
    }
    %c0 = arith.constant 0 : index
    %c0_1 = arith.constant 0 : index
    %c0_2 = arith.constant 0 : index
    %3 = vector.load %arg3[%c0, %c0_1, %c0_2] : memref<1x2x128xi32, #tpu.memory_space<vmem>>, vector<1x2x128xi32>
    %4 = vector.shape_cast %3 : vector<1x2x128xi32> to vector<2x128xi32>
    %c0_3 = arith.constant 0 : index
    %c0_4 = arith.constant 0 : index
    %c0_5 = arith.constant 0 : index
    %c0_6 = arith.constant 0 : index
    %5 = vector.load %arg2[%c0_3, %c0_4, %c0_5, %c0_6] : memref<1x4x2x128xf32, #tpu.memory_space<vmem>>, vector<1x1x2x128xf32>
    %6 = vector.shape_cast %5 : vector<1x1x2x128xf32> to vector<2x128xf32>
    %c0_7 = arith.constant 0 : index
    %c1 = arith.constant 1 : index
    %c0_8 = arith.constant 0 : index
    %c0_9 = arith.constant 0 : index
    %7 = vector.load %arg2[%c0_7, %c1, %c0_8, %c0_9] : memref<1x4x2x128xf32, #tpu.memory_space<vmem>>, vector<1x1x2x128xf32>
    %8 = vector.shape_cast %7 : vector<1x1x2x128xf32> to vector<2x128xf32>
    %c0_10 = arith.constant 0 : index
    %c2 = arith.constant 2 : index
    %c0_11 = arith.constant 0 : index
    %c0_12 = arith.constant 0 : index
    %9 = vector.load %arg2[%c0_10, %c2, %c0_11, %c0_12] : memref<1x4x2x128xf32, #tpu.memory_space<vmem>>, vector<1x1x2x128xf32>
    %10 = vector.shape_cast %9 : vector<1x1x2x128xf32> to vector<2x128xf32>
    %c0_13 = arith.constant 0 : index
    %c3 = arith.constant 3 : index
    %c0_14 = arith.constant 0 : index
    %c0_15 = arith.constant 0 : index
    %11 = vector.load %arg2[%c0_13, %c3, %c0_14, %c0_15] : memref<1x4x2x128xf32, #tpu.memory_space<vmem>>, vector<1x1x2x128xf32>
    %12 = vector.shape_cast %11 : vector<1x1x2x128xf32> to vector<2x128xf32>
    %13 = arith.maximumf %6, %8 : vector<2x128xf32>
    %14 = arith.maximumf %13, %10 : vector<2x128xf32>
    %15 = arith.maximumf %14, %12 : vector<2x128xf32>
    %16 = arith.subf %6, %15 : vector<2x128xf32>
    %17 = math.exp %16 : vector<2x128xf32>
    %18 = arith.subf %8, %15 : vector<2x128xf32>
    %19 = math.exp %18 : vector<2x128xf32>
    %20 = arith.subf %10, %15 : vector<2x128xf32>
    %21 = math.exp %20 : vector<2x128xf32>
    %22 = arith.subf %12, %15 : vector<2x128xf32>
    %23 = math.exp %22 : vector<2x128xf32>
    %24 = arith.addf %17, %19 : vector<2x128xf32>
    %25 = arith.addf %24, %21 : vector<2x128xf32>
    %26 = arith.addf %25, %23 : vector<2x128xf32>
    %cst = arith.constant 1.000000e+00 : f32
    %27 = vector.broadcast %cst : f32 to vector<2x128xf32>
    %28 = arith.divf %27, %26 : vector<2x128xf32>
    %29 = arith.mulf %17, %28 : vector<2x128xf32>
    %c0_i32_16 = arith.constant 0 : i32
    %30 = vector.broadcast %c0_i32_16 : i32 to vector<2x128xi32>
    %31 = arith.cmpi eq, %4, %30 : vector<2x128xi32>
    %cst_17 = arith.constant 1.000000e+00 : f32
    %cst_18 = arith.constant 9.99999993E-9 : f32
    %32 = vector.broadcast %cst_17 : f32 to vector<2x128xf32>
    %33 = vector.broadcast %cst_18 : f32 to vector<2x128xf32>
    %34 = arith.select %31, %32, %33 : vector<2x128xi1>, vector<2x128xf32>
    %c0_19 = arith.constant 0 : index
    %c0_20 = arith.constant 0 : index
    %c0_21 = arith.constant 0 : index
    %c0_22 = arith.constant 0 : index
    %35 = vector.load %arg5[%c0_19, %c0_20, %c0_21, %c0_22] : memref<3x4x2x128xf32, #tpu.memory_space<vmem>>, vector<1x1x2x128xf32>
    %36 = vector.shape_cast %35 : vector<1x1x2x128xf32> to vector<2x128xf32>
    %37 = arith.mulf %29, %34 : vector<2x128xf32>
    %38 = arith.addf %36, %37 : vector<2x128xf32>
    %c0_23 = arith.constant 0 : index
    %c0_24 = arith.constant 0 : index
    %c0_25 = arith.constant 0 : index
    %c0_26 = arith.constant 0 : index
    %39 = vector.load %arg5[%c0_23, %c0_24, %c0_25, %c0_26] : memref<3x4x2x128xf32, #tpu.memory_space<vmem>>, vector<1x1x2x128xf32>
    %40 = vector.shape_cast %39 : vector<1x1x2x128xf32> to vector<2x128xf32>
    %41 = vector.shape_cast %38 : vector<2x128xf32> to vector<1x1x2x128xf32>
    tpu.vector_store %arg5[%c0_23, %c0_24, %c0_25, %c0_26], %41 {strides = array<i32>} : memref<3x4x2x128xf32, #tpu.memory_space<vmem>>, vector<1x1x2x128xf32>,
    %c1_27 = arith.constant 1 : index
    %c0_28 = arith.constant 0 : index
    %c0_29 = arith.constant 0 : index
    %c0_30 = arith.constant 0 : index
    %42 = vector.load %arg5[%c1_27, %c0_28, %c0_29, %c0_30] : memref<3x4x2x128xf32, #tpu.memory_space<vmem>>, vector<1x1x2x128xf32>
    %43 = vector.shape_cast %42 : vector<1x1x2x128xf32> to vector<2x128xf32>
    %44 = arith.addf %43, %29 : vector<2x128xf32>
    %c1_31 = arith.constant 1 : index
    %c0_32 = arith.constant 0 : index
    %c0_33 = arith.constant 0 : index
    %c0_34 = arith.constant 0 : index
    %45 = vector.load %arg5[%c1_31, %c0_32, %c0_33, %c0_34] : memref<3x4x2x128xf32, #tpu.memory_space<vmem>>, vector<1x1x2x128xf32>
    %46 = vector.shape_cast %45 : vector<1x1x2x128xf32> to vector<2x128xf32>
    %47 = vector.shape_cast %44 : vector<2x128xf32> to vector<1x1x2x128xf32>
    tpu.vector_store %arg5[%c1_31, %c0_32, %c0_33, %c0_34], %47 {strides = array<i32>} : memref<3x4x2x128xf32, #tpu.memory_space<vmem>>, vector<1x1x2x128xf32>,
    %c2_35 = arith.constant 2 : index
    %c0_36 = arith.constant 0 : index
    %c0_37 = arith.constant 0 : index
    %c0_38 = arith.constant 0 : index
    %48 = vector.load %arg5[%c2_35, %c0_36, %c0_37, %c0_38] : memref<3x4x2x128xf32, #tpu.memory_space<vmem>>, vector<1x1x2x128xf32>
    %49 = vector.shape_cast %48 : vector<1x1x2x128xf32> to vector<2x128xf32>
    %50 = arith.addf %49, %34 : vector<2x128xf32>
    %c2_39 = arith.constant 2 : index
    %c0_40 = arith.constant 0 : index
    %c0_41 = arith.constant 0 : index
    %c0_42 = arith.constant 0 : index
    %51 = vector.load %arg5[%c2_39, %c0_40, %c0_41, %c0_42] : memref<3x4x2x128xf32, #tpu.memory_space<vmem>>, vector<1x1x2x128xf32>
    %52 = vector.shape_cast %51 : vector<1x1x2x128xf32> to vector<2x128xf32>
    %53 = vector.shape_cast %50 : vector<2x128xf32> to vector<1x1x2x128xf32>
    tpu.vector_store %arg5[%c2_39, %c0_40, %c0_41, %c0_42], %53 {strides = array<i32>} : memref<3x4x2x128xf32, #tpu.memory_space<vmem>>, vector<1x1x2x128xf32>,
    %54 = arith.mulf %19, %28 : vector<2x128xf32>
    %c1_i32 = arith.constant 1 : i32
    %55 = vector.broadcast %c1_i32 : i32 to vector<2x128xi32>
    %56 = arith.cmpi eq, %4, %55 : vector<2x128xi32>
    %cst_43 = arith.constant 1.000000e+00 : f32
    %cst_44 = arith.constant 9.99999993E-9 : f32
    %57 = vector.broadcast %cst_43 : f32 to vector<2x128xf32>
    %58 = vector.broadcast %cst_44 : f32 to vector<2x128xf32>
    %59 = arith.select %56, %57, %58 : vector<2x128xi1>, vector<2x128xf32>
    %c0_45 = arith.constant 0 : index
    %c1_46 = arith.constant 1 : index
    %c0_47 = arith.constant 0 : index
    %c0_48 = arith.constant 0 : index
    %60 = vector.load %arg5[%c0_45, %c1_46, %c0_47, %c0_48] : memref<3x4x2x128xf32, #tpu.memory_space<vmem>>, vector<1x1x2x128xf32>
    %61 = vector.shape_cast %60 : vector<1x1x2x128xf32> to vector<2x128xf32>
    %62 = arith.mulf %54, %59 : vector<2x128xf32>
    %63 = arith.addf %61, %62 : vector<2x128xf32>
    %c0_49 = arith.constant 0 : index
    %c1_50 = arith.constant 1 : index
    %c0_51 = arith.constant 0 : index
    %c0_52 = arith.constant 0 : index
    %64 = vector.load %arg5[%c0_49, %c1_50, %c0_51, %c0_52] : memref<3x4x2x128xf32, #tpu.memory_space<vmem>>, vector<1x1x2x128xf32>
    %65 = vector.shape_cast %64 : vector<1x1x2x128xf32> to vector<2x128xf32>
    %66 = vector.shape_cast %63 : vector<2x128xf32> to vector<1x1x2x128xf32>
    tpu.vector_store %arg5[%c0_49, %c1_50, %c0_51, %c0_52], %66 {strides = array<i32>} : memref<3x4x2x128xf32, #tpu.memory_space<vmem>>, vector<1x1x2x128xf32>,
    %c1_53 = arith.constant 1 : index
    %c1_54 = arith.constant 1 : index
    %c0_55 = arith.constant 0 : index
    %c0_56 = arith.constant 0 : index
    %67 = vector.load %arg5[%c1_53, %c1_54, %c0_55, %c0_56] : memref<3x4x2x128xf32, #tpu.memory_space<vmem>>, vector<1x1x2x128xf32>
    %68 = vector.shape_cast %67 : vector<1x1x2x128xf32> to vector<2x128xf32>
    %69 = arith.addf %68, %54 : vector<2x128xf32>
    %c1_57 = arith.constant 1 : index
    %c1_58 = arith.constant 1 : index
    %c0_59 = arith.constant 0 : index
    %c0_60 = arith.constant 0 : index
    %70 = vector.load %arg5[%c1_57, %c1_58, %c0_59, %c0_60] : memref<3x4x2x128xf32, #tpu.memory_space<vmem>>, vector<1x1x2x128xf32>
    %71 = vector.shape_cast %70 : vector<1x1x2x128xf32> to vector<2x128xf32>
    %72 = vector.shape_cast %69 : vector<2x128xf32> to vector<1x1x2x128xf32>
    tpu.vector_store %arg5[%c1_57, %c1_58, %c0_59, %c0_60], %72 {strides = array<i32>} : memref<3x4x2x128xf32, #tpu.memory_space<vmem>>, vector<1x1x2x128xf32>,
    %c2_61 = arith.constant 2 : index
    %c1_62 = arith.constant 1 : index
    %c0_63 = arith.constant 0 : index
    %c0_64 = arith.constant 0 : index
    %73 = vector.load %arg5[%c2_61, %c1_62, %c0_63, %c0_64] : memref<3x4x2x128xf32, #tpu.memory_space<vmem>>, vector<1x1x2x128xf32>
    %74 = vector.shape_cast %73 : vector<1x1x2x128xf32> to vector<2x128xf32>
    %75 = arith.addf %74, %59 : vector<2x128xf32>
    %c2_65 = arith.constant 2 : index
    %c1_66 = arith.constant 1 : index
    %c0_67 = arith.constant 0 : index
    %c0_68 = arith.constant 0 : index
    %76 = vector.load %arg5[%c2_65, %c1_66, %c0_67, %c0_68] : memref<3x4x2x128xf32, #tpu.memory_space<vmem>>, vector<1x1x2x128xf32>
    %77 = vector.shape_cast %76 : vector<1x1x2x128xf32> to vector<2x128xf32>
    %78 = vector.shape_cast %75 : vector<2x128xf32> to vector<1x1x2x128xf32>
    tpu.vector_store %arg5[%c2_65, %c1_66, %c0_67, %c0_68], %78 {strides = array<i32>} : memref<3x4x2x128xf32, #tpu.memory_space<vmem>>, vector<1x1x2x128xf32>,
    %79 = arith.mulf %21, %28 : vector<2x128xf32>
    %c2_i32 = arith.constant 2 : i32
    %80 = vector.broadcast %c2_i32 : i32 to vector<2x128xi32>
    %81 = arith.cmpi eq, %4, %80 : vector<2x128xi32>
    %cst_69 = arith.constant 1.000000e+00 : f32
    %cst_70 = arith.constant 9.99999993E-9 : f32
    %82 = vector.broadcast %cst_69 : f32 to vector<2x128xf32>
    %83 = vector.broadcast %cst_70 : f32 to vector<2x128xf32>
    %84 = arith.select %81, %82, %83 : vector<2x128xi1>, vector<2x128xf32>
    %c0_71 = arith.constant 0 : index
    %c2_72 = arith.constant 2 : index
    %c0_73 = arith.constant 0 : index
    %c0_74 = arith.constant 0 : index
    %85 = vector.load %arg5[%c0_71, %c2_72, %c0_73, %c0_74] : memref<3x4x2x128xf32, #tpu.memory_space<vmem>>, vector<1x1x2x128xf32>
    %86 = vector.shape_cast %85 : vector<1x1x2x128xf32> to vector<2x128xf32>
    %87 = arith.mulf %79, %84 : vector<2x128xf32>
    %88 = arith.addf %86, %87 : vector<2x128xf32>
    %c0_75 = arith.constant 0 : index
    %c2_76 = arith.constant 2 : index
    %c0_77 = arith.constant 0 : index
    %c0_78 = arith.constant 0 : index
    %89 = vector.load %arg5[%c0_75, %c2_76, %c0_77, %c0_78] : memref<3x4x2x128xf32, #tpu.memory_space<vmem>>, vector<1x1x2x128xf32>
    %90 = vector.shape_cast %89 : vector<1x1x2x128xf32> to vector<2x128xf32>
    %91 = vector.shape_cast %88 : vector<2x128xf32> to vector<1x1x2x128xf32>
    tpu.vector_store %arg5[%c0_75, %c2_76, %c0_77, %c0_78], %91 {strides = array<i32>} : memref<3x4x2x128xf32, #tpu.memory_space<vmem>>, vector<1x1x2x128xf32>,
    %c1_79 = arith.constant 1 : index
    %c2_80 = arith.constant 2 : index
    %c0_81 = arith.constant 0 : index
    %c0_82 = arith.constant 0 : index
    %92 = vector.load %arg5[%c1_79, %c2_80, %c0_81, %c0_82] : memref<3x4x2x128xf32, #tpu.memory_space<vmem>>, vector<1x1x2x128xf32>
    %93 = vector.shape_cast %92 : vector<1x1x2x128xf32> to vector<2x128xf32>
    %94 = arith.addf %93, %79 : vector<2x128xf32>
    %c1_83 = arith.constant 1 : index
    %c2_84 = arith.constant 2 : index
    %c0_85 = arith.constant 0 : index
    %c0_86 = arith.constant 0 : index
    %95 = vector.load %arg5[%c1_83, %c2_84, %c0_85, %c0_86] : memref<3x4x2x128xf32, #tpu.memory_space<vmem>>, vector<1x1x2x128xf32>
    %96 = vector.shape_cast %95 : vector<1x1x2x128xf32> to vector<2x128xf32>
    %97 = vector.shape_cast %94 : vector<2x128xf32> to vector<1x1x2x128xf32>
    tpu.vector_store %arg5[%c1_83, %c2_84, %c0_85, %c0_86], %97 {strides = array<i32>} : memref<3x4x2x128xf32, #tpu.memory_space<vmem>>, vector<1x1x2x128xf32>,
    %c2_87 = arith.constant 2 : index
    %c2_88 = arith.constant 2 : index
    %c0_89 = arith.constant 0 : index
    %c0_90 = arith.constant 0 : index
    %98 = vector.load %arg5[%c2_87, %c2_88, %c0_89, %c0_90] : memref<3x4x2x128xf32, #tpu.memory_space<vmem>>, vector<1x1x2x128xf32>
    %99 = vector.shape_cast %98 : vector<1x1x2x128xf32> to vector<2x128xf32>
    %100 = arith.addf %99, %84 : vector<2x128xf32>
    %c2_91 = arith.constant 2 : index
    %c2_92 = arith.constant 2 : index
    %c0_93 = arith.constant 0 : index
    %c0_94 = arith.constant 0 : index
    %101 = vector.load %arg5[%c2_91, %c2_92, %c0_93, %c0_94] : memref<3x4x2x128xf32, #tpu.memory_space<vmem>>, vector<1x1x2x128xf32>
    %102 = vector.shape_cast %101 : vector<1x1x2x128xf32> to vector<2x128xf32>
    %103 = vector.shape_cast %100 : vector<2x128xf32> to vector<1x1x2x128xf32>
    tpu.vector_store %arg5[%c2_91, %c2_92, %c0_93, %c0_94], %103 {strides = array<i32>} : memref<3x4x2x128xf32, #tpu.memory_space<vmem>>, vector<1x1x2x128xf32>,
    %104 = arith.mulf %23, %28 : vector<2x128xf32>
    %c3_i32 = arith.constant 3 : i32
    %105 = vector.broadcast %c3_i32 : i32 to vector<2x128xi32>
    %106 = arith.cmpi eq, %4, %105 : vector<2x128xi32>
    %cst_95 = arith.constant 1.000000e+00 : f32
    %cst_96 = arith.constant 9.99999993E-9 : f32
    %107 = vector.broadcast %cst_95 : f32 to vector<2x128xf32>
    %108 = vector.broadcast %cst_96 : f32 to vector<2x128xf32>
    %109 = arith.select %106, %107, %108 : vector<2x128xi1>, vector<2x128xf32>
    %c0_97 = arith.constant 0 : index
    %c3_98 = arith.constant 3 : index
    %c0_99 = arith.constant 0 : index
    %c0_100 = arith.constant 0 : index
    %110 = vector.load %arg5[%c0_97, %c3_98, %c0_99, %c0_100] : memref<3x4x2x128xf32, #tpu.memory_space<vmem>>, vector<1x1x2x128xf32>
    %111 = vector.shape_cast %110 : vector<1x1x2x128xf32> to vector<2x128xf32>
    %112 = arith.mulf %104, %109 : vector<2x128xf32>
    %113 = arith.addf %111, %112 : vector<2x128xf32>
    %c0_101 = arith.constant 0 : index
    %c3_102 = arith.constant 3 : index
    %c0_103 = arith.constant 0 : index
    %c0_104 = arith.constant 0 : index
    %114 = vector.load %arg5[%c0_101, %c3_102, %c0_103, %c0_104] : memref<3x4x2x128xf32, #tpu.memory_space<vmem>>, vector<1x1x2x128xf32>
    %115 = vector.shape_cast %114 : vector<1x1x2x128xf32> to vector<2x128xf32>
    %116 = vector.shape_cast %113 : vector<2x128xf32> to vector<1x1x2x128xf32>
    tpu.vector_store %arg5[%c0_101, %c3_102, %c0_103, %c0_104], %116 {strides = array<i32>} : memref<3x4x2x128xf32, #tpu.memory_space<vmem>>, vector<1x1x2x128xf32>,
    %c1_105 = arith.constant 1 : index
    %c3_106 = arith.constant 3 : index
    %c0_107 = arith.constant 0 : index
    %c0_108 = arith.constant 0 : index
    %117 = vector.load %arg5[%c1_105, %c3_106, %c0_107, %c0_108] : memref<3x4x2x128xf32, #tpu.memory_space<vmem>>, vector<1x1x2x128xf32>
    %118 = vector.shape_cast %117 : vector<1x1x2x128xf32> to vector<2x128xf32>
    %119 = arith.addf %118, %104 : vector<2x128xf32>
    %c1_109 = arith.constant 1 : index
    %c3_110 = arith.constant 3 : index
    %c0_111 = arith.constant 0 : index
    %c0_112 = arith.constant 0 : index
    %120 = vector.load %arg5[%c1_109, %c3_110, %c0_111, %c0_112] : memref<3x4x2x128xf32, #tpu.memory_space<vmem>>, vector<1x1x2x128xf32>
    %121 = vector.shape_cast %120 : vector<1x1x2x128xf32> to vector<2x128xf32>
    %122 = vector.shape_cast %119 : vector<2x128xf32> to vector<1x1x2x128xf32>
    tpu.vector_store %arg5[%c1_109, %c3_110, %c0_111, %c0_112], %122 {strides = array<i32>} : memref<3x4x2x128xf32, #tpu.memory_space<vmem>>, vector<1x1x2x128xf32>,
    %c2_113 = arith.constant 2 : index
    %c3_114 = arith.constant 3 : index
    %c0_115 = arith.constant 0 : index
    %c0_116 = arith.constant 0 : index
    %123 = vector.load %arg5[%c2_113, %c3_114, %c0_115, %c0_116] : memref<3x4x2x128xf32, #tpu.memory_space<vmem>>, vector<1x1x2x128xf32>
    %124 = vector.shape_cast %123 : vector<1x1x2x128xf32> to vector<2x128xf32>
    %125 = arith.addf %124, %109 : vector<2x128xf32>
    %c2_117 = arith.constant 2 : index
    %c3_118 = arith.constant 3 : index
    %c0_119 = arith.constant 0 : index
    %c0_120 = arith.constant 0 : index
    %126 = vector.load %arg5[%c2_117, %c3_118, %c0_119, %c0_120] : memref<3x4x2x128xf32, #tpu.memory_space<vmem>>, vector<1x1x2x128xf32>
    %127 = vector.shape_cast %126 : vector<1x1x2x128xf32> to vector<2x128xf32>
    %128 = vector.shape_cast %125 : vector<2x128xf32> to vector<1x1x2x128xf32>
    tpu.vector_store %arg5[%c2_117, %c3_118, %c0_119, %c0_120], %128 {strides = array<i32>} : memref<3x4x2x128xf32, #tpu.memory_space<vmem>>, vector<1x1x2x128xf32>,
    %c0_i32_121 = arith.constant 0 : i32
    %129 = arith.cmpi eq, %arg1, %c0_i32_121 : i32
    %130 = arith.extui %129 : i1 to i32
    %c0_i32_122 = arith.constant 0 : i32
    %131 = arith.cmpi ne, %130, %c0_i32_122 : i32
    scf.if %131 {
      %c0_123 = arith.constant 0 : index
      %c0_124 = arith.constant 0 : index
      %c0_125 = arith.constant 0 : index
      %c0_126 = arith.constant 0 : index
      %132 = vector.load %arg5[%c0_123, %c0_124, %c0_125, %c0_126] : memref<3x4x2x128xf32, #tpu.memory_space<vmem>>, vector<3x4x2x128xf32>
      %cst_127 = arith.constant dense<0.000000e+00> : vector<3x4x2xf32>
      %133 = vector.multi_reduction <add>, %132, %cst_127 [3] : vector<3x4x2x128xf32> to vector<3x4x2xf32>
      %cst_128 = arith.constant dense<0.000000e+00> : vector<3x4xf32>
      %134 = vector.multi_reduction <add>, %133, %cst_128 [2] : vector<3x4x2xf32> to vector<3x4xf32>
      %c0_129 = arith.constant 0 : index
      %c0_130 = arith.constant 0 : index
      %c0_131 = arith.constant 0 : index
      %135 = vector.load %arg4[%c0_129, %c0_130, %c0_131] : memref<1x3x4xf32, #tpu.memory_space<vmem>>, vector<1x3x4xf32>
      %136 = vector.shape_cast %135 : vector<1x3x4xf32> to vector<3x4xf32>
      %137 = vector.shape_cast %134 : vector<3x4xf32> to vector<1x3x4xf32>
      tpu.vector_store %arg4[%c0_129, %c0_130, %c0_131], %137 {strides = array<i32>} : memref<1x3x4xf32, #tpu.memory_space<vmem>>, vector<1x3x4xf32>,
    } else {
    }
    return
  }
  func.func @transform_0(%arg0: i32, %arg1: i32) -> (i32, i32, i32, i32) {
    %c0_i32 = arith.constant 0 : i32
    %c0_i32_0 = arith.constant 0 : i32
    %c0_i32_1 = arith.constant 0 : i32
    return %arg0, %c0_i32, %arg1, %c0_i32_0 : i32, i32, i32, i32
  }
  func.func @transform_1(%arg0: i32, %arg1: i32) -> (i32, i32, i32) {
    %c0_i32 = arith.constant 0 : i32
    %c0_i32_0 = arith.constant 0 : i32
    return %arg0, %arg1, %c0_i32 : i32, i32, i32
  }
  func.func @transform_2(%arg0: i32, %arg1: i32) -> (i32, i32, i32) {
    %c0_i32 = arith.constant 0 : i32
    %c0_i32_0 = arith.constant 0 : i32
    %c0_i32_1 = arith.constant 0 : i32
    return %arg0, %c0_i32, %c0_i32_0 : i32, i32, i32
  }
}

</mosaic_0001>

<bundles_post_ra>
// kernel: tpu_custom_call.1
= control target key start
LH: loop header
LB: loop body
LE: loop exit
PB: predicated region body
PF: predicated region fallthrough
CT: control target
= control target key end

     0   :  { %7 = vsyncpa [#allocation4], 0  ;;  %s1002_s0 = inlined_call_operand.hbm [shape: f32[2,4,2,128], index: 0, kind: input, shape index: {}]   ;;  %s1003_s1 = inlined_call_operand.hbm [shape: s32[2,2,128], index: 1, kind: input, shape index: {}]   ;;  %s1004_s2 = inlined_call_operand.vmem [shape: f32[2,3,4], index: 2, kind: output, shape index: {}]  }
   0x1   :  { %9 = vsyncpa [#allocation4 + $0x1], 0 }
   0x2   :  { %10 = vsyncpa [#allocation6], 0 }
   0x3   :  { %12 = vsyncpa [#allocation6 + $0x1], 0  ;;  %s812_s9 = smov 0   ;;  %s814_s10 = smov 0  }
   0x4   :  { %s816_s11 = smov 0   ;;  %s818_s12 = smov 0  }
   0x5   :  { %s820_s13 = smov 0   ;;  %s822_s14 = smov 0  }
   0x6 LB: > { %s582_s15 = sadd.s32 4294967295, %s789_s14   ;;  %s30_s16 = sadd.s32 1, %s785_s13  ;;  %s789_s14 = sphi %s822_s14, %s18_s14   ;;  %s785_s13 = sphi %s820_s13, %s1016_s13   ;;  %s781_s12 = sphi %s818_s12, %s1015_s12   ;;  %s777_s11 = sphi %s816_s11, %s1014_s11   ;;  %s773_s10 = sphi %s814_s10, %s1013_s10   ;;  %s769_s9 = sphi %s812_s9, %s1012_s9  }
   0x7   : > { %p32_p0 = scmp.ge.s32.totalorder %s30_s16, 2  ;;  %s39_s17 = sadd.s32 1, %s777_s11 }
   0x8   : > { %p46_p1 = scmp.ne.s32.totalorder %s777_s11, %s773_s10  ;;  %p47_p2 = scmp.eq.s32.totalorder %s789_s14, 0 }
   0x9   : > { %s1018_s16 = smov (%p32_p0, %s30_s16), 0  ;;  %p52_p4 = scmp.ne.s32.totalorder %s773_s10, %s769_s9 }
   0xa   : > { %p848_p3 = por %p47_p2, %p46_p1  ;;  %s34_s19 = ssub.s32 %s785_s13, %s1018_s16 }
   0xb   : > { %p53_p5 = scmp.eq.s32.totalorder %s582_s15, 0  ;;  %p37_p6 = scmp.eq.s32.totalorder %s34_s19, 0 }
   0xc   : > { %p612_p8 = scmp.lt.s32.totalorder %s789_s14, 2  ;;  %s864_s22 = sand.u32 1, %s777_s11  }
   0xd   : > { %p855_p7 = por %p53_p5, %p52_p4  ;;  %s600_s23 = sshll.u32 %s785_s13, 7 }
   0xe   : > { %s861_s21 = scalar_select %p37_p6, %s777_s11, %s39_s17  }
   0xf   : > { %s1007_s20 = scalar_select %p855_p7, 1, 0 }
  0x10   : > { %s586_s24 = sshll.u32 %s864_s22, 3  ;;  %s871_s27 = scalar_lea.hbm %s1002_s0, %s600_s23 }
  0x11   : > { %s134_s28 = scalar_lea.vmem [#allocation3], %s586_s24  ;;  %p875_p9 = pnand %p612_p8, %p848_p3 }
  0x12   : > { %s142_s29 = sshll.u32 %s134_s28, 4  ;;  %s131_s3 = scalar_lea.sflag [#allocation4], %s864_s22  ;;  %s879_s29 = int_to_ptr.vmem [resolvable:$true] %s142_s29 }
  0x13   : > { %s675_s4 = scalar_lea.hbm %s871_s27, 128  ;;  %p677_p11 = pneg %p875_p9 }
  0x14   : > { %p676_p10 = scmp.ne.s32.totalorder %s871_s27, %s675_s4  ;;  %s680_s7 = scalar_lea.hbm %s1002_s0, 256 }
  0x15   : > { %p681_p0 = scmp.lt.u32.totalorder %s871_s27, %s1002_s0  ;;  %p682_p1 = scmp.lt.u32.totalorder %s680_s7, %s675_s4 }
  0x16   : > { %p678_p12 = pnand %p677_p11, %p676_p10  ;;  %p684_p3 = scmp.lt.u32.totalorder %s675_s4, %s871_s27 }
  0x17   : > { %p683_p2 = por %p682_p1, %p681_p0 }
  0x18   : > { %p679_p13 = pneg %p678_p12 }
  0x19   : > { %p685_p4 = por %p684_p3, %p683_p2 }
  0x1b   : > { %p686_p5 = pnand %p685_p4, %p679_p13 }
  0x1d   : > { %689 = shalt.err (!%p686_p5)
}
  0x1e   : > { %s690_s15 = scalar_lea.vmem %s879_s29, 128  ;;  %s791_s17 = smov [#allocation3]  }
  0x1f   : > { %p691_p6 = scmp.ne.s32.totalorder %s879_s29, %s690_s15  ;;  %s695_s18 = sshll.u32 %s791_s17, 4  ;;  %s696_s18 = int_to_ptr.vmem [resolvable:$false] %s695_s18 }
  0x20   : > { %s697_s19 = scalar_lea.vmem %s696_s18, 256  ;;  %p698_p12 = scmp.lt.s32.totalorder %s879_s29, %s696_s18 }
  0x21   : > { %p693_p8 = pnand %p691_p6, %p677_p11  ;;  %p699_p0 = scmp.lt.s32.totalorder %s697_s19, %s690_s15 }
  0x23   : > { %p694_p10 = pneg %p693_p8  ;;  %p700_p1 = por %p699_p0, %p698_p12 }
  0x25   : > { %p701_p2 = pnand %p700_p1, %p694_p10 }
  0x27   : > { %704 = shalt.err (!%p701_p2)
}
  0x28   : > { %s792_s23 = smov 32   ;;  %s793_s24 = smov 2  }
  0x29   : > { %608 = dma.hbm_to_vmem [thread:$0]  (!%p875_p9), %s871_s27, 128, %s879_s29, %s131_s3, %s792_s23, %s792_s23, %s793_s24  }
  0x2a   : > { %p591_p13 = scmp.ge.s32.totalorder %s789_s14, 1  ;;  %p169_p3 = scmp.lt.s32.totalorder %s789_s14, 3 }
  0x2b   : > { %s589_s25 = sshll.u32 %s864_s22, 1  ;;  %s590_s28 = sshll.u32 %s785_s13, 5 }
  0x2c   : > { %p912_p4 = pnand %p591_p13, %p169_p3  ;;  %s156_s4 = scalar_lea.vmem [#allocation5], %s589_s25 }
  0x2d   : > { %s164_s5 = sshll.u32 %s156_s4, 4  ;;  %s920_s8 = scalar_lea.hbm %s1003_s1, %s590_s28  ;;  %s165_s5 = int_to_ptr.vmem [resolvable:$true] %s164_s5 }
  0x2e   : > { %s1009_s26 = scalar_select %p912_p4, 1, 0 }
  0x2f   : > { %s153_s27 = scalar_lea.sflag [#allocation6], %s864_s22  ;;  %s705_s29 = scalar_lea.hbm %s920_s8, 32 }
  0x30   : > { %p706_p5 = scmp.ne.s32.totalorder %s920_s8, %s705_s29  ;;  %s710_s15 = scalar_lea.hbm %s1003_s1, 64 }
  0x31   : > { %p711_p10 = scmp.lt.u32.totalorder %s920_s8, %s1003_s1  ;;  %p712_p12 = scmp.lt.u32.totalorder %s710_s15, %s705_s29 }
  0x32   : > { %p708_p6 = pnand %p706_p5, %p677_p11  ;;  %p714_p1 = scmp.lt.u32.totalorder %s705_s29, %s920_s8 }
  0x33   : > { %p713_p0 = por %p712_p12, %p711_p10 }
  0x34   : > { %p709_p8 = pneg %p708_p6 }
  0x35   : > { %p715_p2 = por %p714_p1, %p713_p0 }
  0x37   : > { %p716_p13 = pnand %p715_p2, %p709_p8 }
  0x39   : > { %719 = shalt.err (!%p716_p13)
}
  0x3a   : > { %s720_s22 = scalar_lea.vmem %s165_s5, 32  ;;  %s794_s19 = smov [#allocation5]  }
  0x3b   : > { %p721_p3 = scmp.ne.s32.totalorder %s165_s5, %s720_s22  ;;  %s725_s23 = sshll.u32 %s794_s19, 4  ;;  %s726_s23 = int_to_ptr.vmem [resolvable:$false] %s725_s23 }
  0x3c   : > { %s727_s24 = scalar_lea.vmem %s726_s23, 64  ;;  %p728_p7 = scmp.lt.s32.totalorder %s165_s5, %s726_s23 }
  0x3d   : > { %p723_p5 = pnand %p721_p3, %p677_p11  ;;  %p729_p4 = scmp.lt.s32.totalorder %s727_s24, %s720_s22 }
  0x3f   : > { %p724_p6 = pneg %p723_p5  ;;  %p730_p10 = por %p729_p4, %p728_p7 }
  0x41   : > { %p731_p12 = pnand %p730_p10, %p724_p6 }
  0x43   : > { %734 = shalt.err (!%p731_p12)
}
  0x44   : > { %611 = dma.hbm_to_vmem [thread:$0]  (!%p875_p9), %s920_s8, 32, %s165_s5, %s153_s27  }
  0x45   : > { %p1010_p8 = scmp.ne.s32.totalorder %s1009_s26, 0 }
  0x46   : > { %s175_s25 = sand.u32 (!%p1010_p8), 1, %s773_s10   ;;  %p1011_p11 = scmp.ne.s32.totalorder (!%p1010_p8), %s1007_s20, 0 }
  0x47   : > { %173 = sbr.rel (%p1010_p8) target bundleno = 447 (0x1bf), region = 28  ;;  %s592_s28 = sshll.u32 (!%p1010_p8), %s175_s25, 3 }
  0x48   : > { %s176_s4 = scalar_lea.sflag (!%p1010_p8), [#allocation4], %s175_s25  ;;  %s179_s6 = scalar_lea.vmem (!%p1010_p8), [#allocation3], %s592_s28 }
  0x4e   : > { %760 = dma.done.wait (%p1011_p11), %s176_s4, 128  }
  0x4f   : > { %762 = vsyncadd (%p1011_p11), %s176_s4, 4294967168  ;;  %s593_s7 = sshll.u32 %s175_s25, 1  ;;  %s185_s29 = scalar_lea.sflag [#allocation6], %s175_s25 }
  0x50   : > { %s188_s30 = scalar_lea.vmem [#allocation5], %s593_s7 }
  0x51   : > { %764 = dma.done.wait (%p1011_p11), %s185_s29, 32  }
  0x52   : > { %766 = vsyncadd (%p1011_p11), %s185_s29, 4294967264  ;;  %v795_v0 = vmov 0.0   ;;  %v233_v1 = vld [vmem:[%s188_s30] sm:$0x3]  ;;  %v234_v2 = vld [vmem:[%s179_s6] sm:$0x3] }
  0x53   : > { %230 = vst [vmem:[#allocation2 + $0x12] sm:$0x3] %v795_v0  ;;  %221 = vst [vmem:[#allocation2] sm:$0x3] %v795_v0  ;;  %v595_v3 = vld [vmem:[%s179_s6 + $0x2] sm:$0x3] }
  0x54   : > { %222 = vst [vmem:[#allocation2 + $0x2] sm:$0x3] %v795_v0  ;;  %223 = vst [vmem:[#allocation2 + $0x4] sm:$0x3] %v795_v0  ;;  %v596_v4 = vld [vmem:[%s179_s6 + $0x4] sm:$0x3]  ;;  %v241_v6 = vmax.f32 %v234_v2, %v595_v3 }
  0x55   : > { %224 = vst [vmem:[#allocation2 + $0x6] sm:$0x3] %v795_v0  ;;  %225 = vst [vmem:[#allocation2 + $0x8] sm:$0x3] %v795_v0  ;;  %v597_v5 = vld [vmem:[%s179_s6 + $0x6] sm:$0x3] }
  0x56   : > { %226 = vst [vmem:[#allocation2 + $0xa] sm:$0x3] %v795_v0  ;;  %227 = vst [vmem:[#allocation2 + $0xc] sm:$0x3] %v795_v0  ;;  %vm277_vm0 = vcmp.eq.s32.totalorder %v233_v1, 1  ;;  %vm262_vm1 = vcmp.eq.s32.totalorder %v233_v1, 0  ;;  %v242_v12 = vmax.f32 %v241_v6, %v596_v4 }
  0x57   : > { %228 = vst [vmem:[#allocation2 + $0xe] sm:$0x3] %v795_v0  ;;  %229 = vst [vmem:[#allocation2 + $0x10] sm:$0x3] %v795_v0  ;;  %v796_v7 = vmov 1e-08  }
  0x58   : > { %231 = vst [vmem:[#allocation2 + $0x14] sm:$0x3] %v795_v0  ;;  %232 = vst [vmem:[#allocation2 + $0x16] sm:$0x3] %v795_v0  ;;  %v278_v8 = vsel %vm277_vm0, 1.0, %v796_v7  ;;  %v263_v10 = vsel %vm262_vm1, 1.0, %v796_v7  ;;  %v243_v15 = vmax.f32 %v242_v12, %v597_v5 }
  0x59   : > { %vm293_vm2 = vcmp.eq.s32.totalorder %v233_v1, 2  ;;  %vm309_vm3 = vcmp.eq.s32.totalorder %v233_v1, 3  ;;  %vm339_vm4 = vcmask 1041408   ;;  %vm440_vm5 = vcmask 1042434   ;;  %p213_p7 = scmp.lt.s32.totalorder %s781_s12, 1 }
  0x5a   : > { %v289_v9 = vld [vmem:[#allocation2 + $0x12] sm:$0x3]  ;;  %v294_v16 = vsel %vm293_vm2, 1.0, %v796_v7  ;;  %v310_v17 = vsel %vm309_vm3, 1.0, %v796_v7  ;;  %v244_v20 = vsub.f32 %v234_v2, %v243_v15  ;;  %v247_v21 = vsub.f32 %v595_v3, %v243_v15  ;;  %v264_v50 = vld [vmem:[#allocation2] sm:$0x3] }
  0x5b   : > { %v290_v13 = vadd.f32 %v289_v9, %v278_v8  ;;  %v250_v22 = vsub.f32 %v596_v4, %v243_v15  ;;  %v253_v23 = vsub.f32 %v597_v5, %v243_v15  ;;  %v280_v51 = vld [vmem:[#allocation2 + $0x2] sm:$0x3]  ;;  %v296_v56 = vld [vmem:[#allocation2 + $0x4] sm:$0x3]  ;;  %vm438_vm6 = vcmask 1041409   ;;  %s1020_s12 = smov (!%p213_p7, %s781_s12), 1 }
  0x5c   : > { %v245_v26 = vmul.f32 1.442695, %v244_v20  ;;  %v248_v27 = vmul.f32 1.442695, %v247_v21  ;;  %v269_v42 = vld [vmem:[#allocation2 + $0x8] sm:$0x3] }
  0x5d   : > { %291 = vst [vmem:[#allocation2 + $0x12] sm:$0x3] %v290_v13  ;;  %v251_v28 = vmul.f32 1.442695, %v250_v22  ;;  %v254_v29 = vmul.f32 1.442695, %v253_v23 }
  0x5e   : > { %v273_v11 = vld [vmem:[#allocation2 + $0x10] sm:$0x3]  ;;  %665 = vpow2.f32 %v245_v26  ;;  %v285_v43 = vld [vmem:[#allocation2 + $0xa] sm:$0x3]  ;;  %v301_v47 = vld [vmem:[#allocation2 + $0xc] sm:$0x3] }
  0x5f   : > { %v274_v14 = vadd.f32 %v273_v11, %v263_v10  ;;  %v305_v18 = vld [vmem:[#allocation2 + $0x14] sm:$0x3]  ;;  %v321_v19 = vld [vmem:[#allocation2 + $0x16] sm:$0x3]  ;;  %667 = vpow2.f32 %v248_v27  ;;  %v317_v49 = vld [vmem:[#allocation2 + $0xe] sm:$0x3] }
  0x60   : > { %v306_v24 = vadd.f32 %v305_v18, %v294_v16  ;;  %v322_v25 = vadd.f32 %v321_v19, %v310_v17  ;;  %669 = vpow2.f32 %v251_v28  ;;  %v312_v57 = vld [vmem:[#allocation2 + $0x6] sm:$0x3]  ;;  %vm442_vm7 = vcmask 1043459   ;;  %s594_s20 = sshll.u32 %s1020_s12, 2 }
  0x61   : > { %275 = vst [vmem:[#allocation2 + $0x10] sm:$0x3] %v274_v14  ;;  %671 = vpow2.f32 %v254_v29  ;;  %vm453_vm8 = vcmask 11264   ;;  %s216_s8 = scalar_lea.vmem %s1004_s2, %s594_s20  ;;  %vm481_vm9 = vcmask 26624  }
  0x62   : > { %307 = vst [vmem:[#allocation2 + $0x14] sm:$0x3] %v306_v24  ;;  %323 = vst [vmem:[#allocation2 + $0x16] sm:$0x3] %v322_v25  ;;  %v388_v24 = vlaneseq }
  0x64   : > { %v336_v30 = vld [vmem:[#allocation2 + $0x12] sm:$0x3]  ;;  %v389_v27 = vand.u32 127, %v388_v24  ;;  %v391_v28 = vshrl.u32 %v388_v24, 7 }
  0x65   : > { %v367_v32 = vsel %vm339_vm4, %v336_v30, 0.0 }
  0x66   : > { %368 = vadd.xlane.f32.xlu1 %v367_v32 }
  0x68   : > { %v335_v31 = vld [vmem:[#allocation2 + $0x10] sm:$0x3]  ;;  %v666_v34 = vpop.eup %665 }
  0x69   : > { %v364_v33 = vsel %vm339_vm4, %v335_v31, 0.0  ;;  %v668_v35 = vpop.eup %667  ;;  %v337_v19 = vld [vmem:[#allocation2 + $0x14] sm:$0x3]  ;;  %v392_v31 = vsub.s32 %v389_v27, %v391_v28 }
  0x6a   : > { %365 = vadd.xlane.f32.xlu0 %v364_v33  ;;  %v670_v36 = vpop.eup %669  ;;  %v256_v37 = vadd.f32 %v668_v35, %v666_v34  ;;  %v370_v21 = vsel %vm339_vm4, %v337_v19, 0.0 }
  0x6b   : > { %v672_v38 = vpop.eup %671 }
  0x6c   : > { %v257_v39 = vadd.f32 %v670_v36, %v256_v37 }
  0x6e   : > { %v258_v40 = vadd.f32 %v672_v38, %v257_v39 }
  0x70   : > { %673 = vrcp.f32 %v258_v40 }
  0x7a   : > { %v674_v41 = vpop.eup %673 }
  0x7b   : > { %v276_v44 = vmul.f32 %v674_v41, %v668_v35  ;;  %v261_v45 = vmul.f32 %v674_v41, %v666_v34  ;;  %v292_v46 = vmul.f32 %v674_v41, %v670_v36  ;;  %v308_v48 = vmul.f32 %v674_v41, %v672_v38 }
  0x7d   : > { %v281_v52 = vmul.f32 %v278_v8, %v276_v44  ;;  %v265_v53 = vmul.f32 %v263_v10, %v261_v45  ;;  %v270_v54 = vadd.f32 %v269_v42, %v261_v45  ;;  %v286_v55 = vadd.f32 %v285_v43, %v276_v44 }
  0x7e   : > { %v302_v58 = vadd.f32 %v301_v47, %v292_v46  ;;  %v297_v59 = vmul.f32 %v294_v16, %v292_v46  ;;  %v318_v60 = vadd.f32 %v317_v49, %v308_v48  ;;  %v313_v61 = vmul.f32 %v310_v17, %v308_v48  ;;  %v338_v17 = vld [vmem:[#allocation2 + $0x16] sm:$0x3] }
  0x7f   : > { %271 = vst [vmem:[#allocation2 + $0x8] sm:$0x3] %v270_v54  ;;  %v266_v62 = vadd.f32 %v265_v53, %v264_v50  ;;  %287 = vst [vmem:[#allocation2 + $0xa] sm:$0x3] %v286_v55  ;;  %v282_v63 = vadd.f32 %v281_v52, %v280_v51  ;;  %v373_v20 = vsel %vm339_vm4, %v338_v17, 0.0 }
  0x80   : > { %303 = vst [vmem:[#allocation2 + $0xc] sm:$0x3] %v302_v58  ;;  %v298_v0 = vadd.f32 %v297_v59, %v296_v56  ;;  %319 = vst [vmem:[#allocation2 + $0xe] sm:$0x3] %v318_v60  ;;  %v314_v1 = vadd.f32 %v313_v61, %v312_v57 }
  0x81   : > { %267 = vst [vmem:[#allocation2] sm:$0x3] %v266_v62  ;;  %283 = vst [vmem:[#allocation2 + $0x2] sm:$0x3] %v282_v63 }
  0x82   : > { %299 = vst [vmem:[#allocation2 + $0x4] sm:$0x3] %v298_v0  ;;  %315 = vst [vmem:[#allocation2 + $0x6] sm:$0x3] %v314_v1 }
  0x86   : > { %v331_v2 = vld [vmem:[#allocation2 + $0x8] sm:$0x3]  ;;  %v332_v3 = vld [vmem:[#allocation2 + $0xa] sm:$0x3] }
  0x87   : > { %v352_v4 = vsel %vm339_vm4, %v331_v2, 0.0  ;;  %v355_v8 = vsel %vm339_vm4, %v332_v3, 0.0  ;;  %v333_v9 = vld [vmem:[#allocation2 + $0xc] sm:$0x3]  ;;  %v334_v13 = vld [vmem:[#allocation2 + $0xe] sm:$0x3] }
  0x88   : > { %353 = vadd.xlane.f32.xlu1 %v352_v4  ;;  %v327_v5 = vld [vmem:[#allocation2] sm:$0x3]  ;;  %v328_v6 = vld [vmem:[#allocation2 + $0x2] sm:$0x3]  ;;  %v358_v12 = vsel %vm339_vm4, %v333_v9, 0.0  ;;  %v361_v16 = vsel %vm339_vm4, %v334_v13, 0.0 }
  0x89   : > { %v340_v7 = vsel %vm339_vm4, %v327_v5, 0.0  ;;  %v343_v10 = vsel %vm339_vm4, %v328_v6, 0.0  ;;  %v329_v11 = vld [vmem:[#allocation2 + $0x4] sm:$0x3]  ;;  %v330_v15 = vld [vmem:[#allocation2 + $0x6] sm:$0x3] }
  0x8a   : > { %341 = vadd.xlane.f32.xlu0 %v340_v7  ;;  %v346_v14 = vsel %vm339_vm4, %v329_v11, 0.0  ;;  %v349_v18 = vsel %vm339_vm4, %v330_v15, 0.0 }
  0x8c   : > { %356 = vadd.xlane.f32.xlu1 %v355_v8 }
  0x8e   : > { %344 = vadd.xlane.f32.xlu0 %v343_v10 }
  0x90   : > { %359 = vadd.xlane.f32.xlu1 %v358_v12 }
  0x92   : > { %347 = vadd.xlane.f32.xlu0 %v346_v14 }
  0x94   : > { %362 = vadd.xlane.f32.xlu1 %v361_v16 }
  0x96   : > { %350 = vadd.xlane.f32.xlu0 %v349_v18 }
  0x98   : > { %374 = vadd.xlane.f32.xlu1 %v373_v20 }
  0x9a   : > { %371 = vadd.xlane.f32.xlu0 %v370_v21 }
  0xf3   : > { %v369_v22 = vpop.xlane.xlu1 %368 }
  0xf4   : > { %v429_v48 = vrot.slane %v369_v22, %v392_v31 }
  0xf7   : > { %v366_v23 = vpop.xlane.xlu0 %365 }
  0xf8   : > { %v425_v49 = vrot.slane %v366_v23, %v392_v31 }
  0xfa   : > { %v447_v58 = vsel %vm438_vm6, %v429_v48, %v425_v49 }
 0x115   : > { %v354_v25 = vpop.xlane.xlu1 %353 }
 0x116   : > { %v409_v33 = vrot.slane %v354_v25, %v392_v31 }
 0x117   : > { %v342_v26 = vpop.xlane.xlu0 %341 }
 0x118   : > { %v393_v40 = vrot.slane %v342_v26, %v392_v31 }
 0x119   : > { %v357_v29 = vpop.xlane.xlu1 %356 }
 0x11a   : > { %v413_v34 = vrot.slane %v357_v29, %v392_v31 }
 0x11b   : > { %v345_v30 = vpop.xlane.xlu0 %344 }
 0x11c   : > { %v397_v37 = vrot.slane %v345_v30, %v392_v31  ;;  %v444_v41 = vsel %vm438_vm6, %v413_v34, %v409_v33 }
 0x11d   : > { %v360_v32 = vpop.xlane.xlu1 %359 }
 0x11e   : > { %v417_v35 = vrot.slane %v360_v32, %v392_v31  ;;  %v439_v45 = vsel %vm438_vm6, %v397_v37, %v393_v40 }
 0x11f   : > { %v348_v36 = vpop.xlane.xlu0 %347 }
 0x120   : > { %v401_v38 = vrot.slane %v348_v36, %v392_v31  ;;  %v445_v44 = vsel %vm440_vm5, %v417_v35, %v444_v41 }
 0x121   : > { %v363_v39 = vpop.xlane.xlu1 %362 }
 0x122   : > { %v421_v42 = vrot.slane %v363_v39, %v392_v31  ;;  %v441_v52 = vsel %vm440_vm5, %v401_v38, %v439_v45 }
 0x123   : > { %v351_v43 = vpop.xlane.xlu0 %350 }
 0x124   : > { %v405_v46 = vrot.slane %v351_v43, %v392_v31  ;;  %v446_v47 = vsel %vm442_vm7, %v421_v42, %v445_v44 }
 0x125   : > { %v457_v50 = vsel %vm453_vm8, %v446_v47, 0.0  ;;  %v375_v51 = vpop.xlane.xlu1 %374 }
 0x126   : > { %458 = vadd.xlane.f32.xlu1 %v457_v50  ;;  %v443_v53 = vsel %vm442_vm7, %v405_v46, %v441_v52  ;;  %v437_v55 = vrot.slane %v375_v51, %v392_v31 }
 0x127   : > { %v372_v54 = vpop.xlane.xlu0 %371  ;;  %v454_v56 = vsel %vm453_vm8, %v443_v53, 0.0 }
 0x128   : > { %v433_v57 = vrot.slane %v372_v54, %v392_v31  ;;  %455 = vadd.xlane.f32.xlu0 %v454_v56 }
 0x12a   : > { %v448_v59 = vsel %vm440_vm5, %v433_v57, %v447_v58 }
 0x12b   : > { %v449_v60 = vsel %vm442_vm7, %v437_v55, %v448_v59 }
 0x12c   : > { %v460_v61 = vsel %vm453_vm8, %v449_v60, 0.0 }
 0x12d   : > { %461 = vadd.xlane.f32.xlu0 %v460_v61 }
 0x1b3   : > { %v459_v63 = vpop.xlane.xlu1 %458 }
 0x1b4   : > { %v473_v1 = vrot.slane %v459_v63, %v392_v31 }
 0x1b5   : > { %v456_v62 = vpop.xlane.xlu0 %455 }
 0x1b6   : > { %v469_v0 = vrot.slane %v456_v62, %v392_v31 }
 0x1b8   : > { %v478_v4 = vsel %vm438_vm6, %v473_v1, %v469_v0 }
 0x1ba   : > { %v462_v2 = vpop.xlane.xlu0 %461 }
 0x1bb   : > { %v477_v3 = vrot.slane %v462_v2, %v392_v31 }
 0x1bd   : > { %v479_v5 = vsel %vm440_vm5, %v477_v3, %v478_v4 }
 0x1be   : > { %482 = vst.msk [vmem:[%s216_s8] sm:$0x7] %vm481_vm9, %v479_v5 }
 0x1bf PF: > { %s18_s14 = sadd.s32 1, %s789_s14   ;;  %s1012_s9 = smov %s773_s10 }
 0x1c0   : > { %p15_p9 = scmp.ge.s32.totalorder %s18_s14, 4   ;;  %s1013_s10 = smov %s777_s11 }
 0x1c1   : > { %s1014_s11 = smov %s861_s21  ;;  %s1015_s12 = smov %s785_s13 }
 0x1c2   : > { %s1016_s13 = smov %s1018_s16  ;;  %17 = sbr.rel (!%p15_p9) target bundleno = 6 (0x6), region = 103 }
 0x1c9   :  { %502 = vsyncpa [#allocation4], 1 }
 0x1ca   :  { %504 = vsyncpa [#allocation4 + $0x1], 1 }
 0x1cb   :  { %505 = vsyncpa [#allocation6], 1 }
 0x1cc   :  { %507 = vsyncpa [#allocation6 + $0x1], 1 }

</bundles_post_ra>
